<compile_context>
chip_gen: v7x
topology: tpu7x:2x2x1
jax: 0.10.0
libtpu: 0.0.40
codegen_flags: <defaults>
</compile_context>

<pallas_src>
import functools

import numpy as np
import jax
import jax.numpy as jnp
from jax.experimental import pallas as pl
from jax.experimental.pallas import tpu as pltpu


def _pad_to(n, m):
    return ((n + m - 1) // m) * m


# ----------------------------- Pallas kernels ------------------------------

_DECODE_TILE_N = 512          # lane-dim tile for the decode kernel


def _decode_kernel(lp_ref, boxes_ref, *, var0, var1):
    """center_size(prior) + decode(loc, prior, variance) for one lane tile.

    lp_ref:    [8, TN]  rows 0-3 = loc (tx, ty, tw, th),
                        rows 4-7 = prior point form (xmin, ymin, xmax, ymax).
    boxes_ref: [4, TN]  rows = x1, y1, x2, y2.
    """
    lp = lp_ref[...]
    tx, ty, tw, th = (lp[k:k + 1, :] for k in range(4))
    px1, py1, px2, py2 = (lp[k:k + 1, :] for k in range(4, 8))

    # center_size: point-form prior -> (cx, cy, w, h)
    pcx = (px2 + px1) * 0.5
    pcy = (py2 + py1) * 0.5
    pw = px2 - px1
    ph = py2 - py1

    # decode (same op ordering as the reference implementation)
    bcx = pcx + tx * var0 * pw
    bcy = pcy + ty * var0 * ph
    bw = pw * jnp.exp(tw * var1)
    bh = ph * jnp.exp(th * var1)
    x1 = bcx - bw * 0.5
    y1 = bcy - bh * 0.5
    boxes_ref[0:1, :] = x1
    boxes_ref[1:2, :] = y1
    boxes_ref[2:3, :] = bw + x1
    boxes_ref[3:4, :] = bh + y1


def _pallas_decode(loc_prior_cm, var0, var1, tile_n):
    Np = loc_prior_cm.shape[1]
    kern = functools.partial(_decode_kernel, var0=var0, var1=var1)
    return pl.pallas_call(
        kern,
        out_shape=jax.ShapeDtypeStruct((4, Np), jnp.float32),
        grid=(Np // tile_n,),
        in_specs=[pl.BlockSpec((8, tile_n), lambda i: (0, i))],
        out_specs=pl.BlockSpec((4, tile_n), lambda i: (0, i)),
        compiler_params=pltpu.CompilerParams(
            dimension_semantics=("parallel",)),
    )(loc_prior_cm)


@functools.partial(jax.jit, static_argnames=("num_priors", "var0", "var1"))
def _decode_device(loc, prior, *, num_priors, var0, var1):
    """Fused device path: layout glue + Pallas decode.  Returns boxes [N, 4]."""
    loc_cm = jnp.reshape(loc[0], (num_priors, 4)).T.astype(jnp.float32)
    prior_cm = jnp.reshape(prior[0, 0], (num_priors, 4)).T.astype(jnp.float32)
    lp = jnp.concatenate([loc_cm, prior_cm], axis=0)              # [8, N]
    Np = max(_DECODE_TILE_N, _pad_to(num_priors, _DECODE_TILE_N))
    pad = Np - num_priors
    if pad:
        pad_cols = jnp.tile(
            jnp.array([[0.], [0.], [0.], [0.], [0.], [0.], [1.], [1.]],
                      jnp.float32), (1, pad))
        lp = jnp.concatenate([lp, pad_cols], axis=1)
    boxes_cm = _pallas_decode(lp, var0, var1, _DECODE_TILE_N)     # [4, Np]
    return boxes_cm[:, :num_priors].T                             # [N, 4]


def _suppress_kernel(bcm_ref, brm_ref, sup_ref, *, overlap):
    """Pairwise suppression tile: sup[i, j] = 1.0 iff IoU(box_i, box_j) > overlap.

    Division-free compare form with exact parity to `inter / union <= overlap`
    of the reference nms():
      union > 0 : IoU > overlap   <=>  inter > overlap * union
      union == 0: inter/0 -> inf or NaN, both fail `IoU <= overlap` -> suppressed
      union <  0: IoU <= 0 <= overlap                              -> kept
    """
    bcm = bcm_ref[...]                                   # [4, TC]  coord-major
    brm = brm_ref[...]                                   # [TR, 4]  row-major
    x1r, y1r, x2r, y2r = (bcm[k:k + 1, :] for k in range(4))   # [1, TC]
    x1c, y1c, x2c, y2c = (brm[:, k:k + 1] for k in range(4))   # [TR, 1]

    area_r = (x2r - x1r) * (y2r - y1r)                   # [1, TC]
    area_c = (x2c - x1c) * (y2c - y1c)                   # [TR, 1]

    xx1 = jnp.maximum(x1c, x1r)                          # [TR, TC]
    yy1 = jnp.maximum(y1c, y1r)
    xx2 = jnp.minimum(x2c, x2r)
    yy2 = jnp.minimum(y2c, y2r)
    w = jnp.maximum(xx2 - xx1, 0.0)
    h = jnp.maximum(yy2 - yy1, 0.0)
    inter = w * h
    union = area_c + area_r - inter
    sup = jnp.where(union > 0.0, inter > overlap * union, union == 0.0)
    # NOTE: symmetry (sup[i,j]==sup[j,i]) could halve the tiles computed, but
    # post-compaction the matrix is tiny, so it is not worth the host-side
    # index gymnastics here.
    sup_ref[...] = sup.astype(jnp.float32)


def _pallas_suppress(boxes_cm, boxes_rm, overlap, tile_r, tile_c):
    Nc = boxes_rm.shape[0]
    kern = functools.partial(_suppress_kernel, overlap=overlap)
    return pl.pallas_call(
        kern,
        out_shape=jax.ShapeDtypeStruct((Nc, Nc), jnp.float32),
        grid=(Nc // tile_r, Nc // tile_c),
        in_specs=[pl.BlockSpec((4, tile_c), lambda r, c: (0, c)),
                  pl.BlockSpec((tile_r, 4), lambda r, c: (r, 0))],
        out_specs=pl.BlockSpec((tile_r, tile_c), lambda r, c: (r, c)),
        compiler_params=pltpu.CompilerParams(
            dimension_semantics=("parallel", "parallel")),
    )(boxes_cm, boxes_rm)


@functools.partial(jax.jit, static_argnames=("overlap", "tile_r", "tile_c"))
def _suppress_device(boxes_rm, *, overlap, tile_r, tile_c):
    # The coordinate-major copy is produced on-device and fused with the
    # pallas_call inside this single jit (one dispatch, no host round trip).
    return _pallas_suppress(boxes_rm.T, boxes_rm, overlap, tile_r, tile_c)


def _choose_tiles(m):
    """Pad the candidate count so fixed (tile_r, tile_c) tiles divide it."""
    tile_r = 256
    if m <= 2048:
        n = max(256, _pad_to(m, 256))
        tile_c = n                  # single lane-dense column strip
    else:
        n = _pad_to(m, 2048)
        tile_c = 2048               # 256x2048 f32 ~ 2 MiB/tile, v7x-safe
    return n, tile_r, tile_c


# ------------------------- host-side glue (NMS etc.) ------------------------


def _nms_from_suppress(sup):
    """Greedy NMS identical to the reference nms(); candidates are already
    sorted ascending by score and the pairwise suppression mask is precomputed."""
    # TODO(synk): the greedy suppression loop is inherently sequential with a
    # data-dependent output count; it stays on host.
    m = sup.shape[0]
    keep = np.zeros(m, dtype=np.int64)
    if m == 0:
        return keep, 0
    idx = np.arange(m)
    count = 0
    while idx.size > 0:
        i = int(idx[-1])
        keep[count] = i
        count += 1
        if idx.size == 1:
            break
        idx = idx[:-1]
        idx = idx[~sup[i, idx]]          # keep where IoU <= overlap
    return keep, count


class Detection:
    def __init__(self, num_classes, bkg_label, top_k, conf_thresh, nms_thresh,
                 keep_top_k):
        self.num_classes = num_classes
        self.background_label = bkg_label
        self.top_k = top_k
        if nms_thresh <= 0:
            raise ValueError('nms_threshold must be non negative.')
        self.nms_thresh = nms_thresh
        self.conf_thresh = conf_thresh
        self.keep_top_k = keep_top_k
        self.variance = [0.1, 0.2]

    def forward(self, loc, conf, prior):
        num = loc.shape[0]
        assert num == 1
        C = self.num_classes
        num_priors = prior.shape[2] // 4

        # --- device: fused layout glue + Pallas decode (boxes back row-major)
        boxes = np.asarray(_decode_device(jnp.asarray(loc), jnp.asarray(prior),
                                          num_priors=num_priors,
                                          var0=self.variance[0],
                                          var1=self.variance[1]))      # [N, 4]
        conf_np = np.asarray(jnp.asarray(conf))[0].reshape(
            num_priors, C).T.astype(np.float32)                        # [C, N]

        def _per_class(cl):
            c_mask = conf_np[cl] > self.conf_thresh
            if c_mask.sum() == 0:
                return None
            sel = np.nonzero(c_mask)[0]
            scores = conf_np[cl][sel]                  # masked scores
            bxs = boxes[sel]                           # masked boxes
            # Candidate compaction: greedy NMS only ever inspects the top_k
            # highest-scoring thresholded boxes, so the pairwise kernel runs
            # on <= top_k candidates instead of all num_priors.
            order = np.argsort(scores, kind="stable")  # ascending, like torch.sort
            cand = order[-self.top_k:]                 # indices into masked arrays
            m = cand.shape[0]
            cand_boxes = bxs[cand].astype(np.float32)  # [m, 4]

            nc, tile_r, tile_c = _choose_tiles(m)
            if nc > m:                                  # pad with sane unit boxes
                pad_boxes = np.tile(np.array([[0.0, 0.0, 1.0, 1.0]], np.float32),
                                    (nc - m, 1))
                cand_boxes = np.concatenate([cand_boxes, pad_boxes], axis=0)

            sup = np.asarray(_suppress_device(jnp.asarray(cand_boxes),
                                              overlap=float(self.nms_thresh),
                                              tile_r=tile_r,
                                              tile_c=tile_c))[:m, :m] > 0.5
            ids, count = _nms_from_suppress(sup)
            count = min(count, self.keep_top_k)
            kept = cand[ids[:count]]                   # back to masked indices
            extra = np.tile(np.array([[0.0, float(cl)]], np.float32),
                            (count, 1))
            return np.concatenate(
                [extra, scores[kept, None].astype(np.float32),
                 bxs[kept].astype(np.float32)], axis=1)

        if C == 2:
            out = _per_class(1)
            if out is None:
                return jnp.array([0.0, -1.0, -1.0, -1.0, -1.0, -1.0, -1.0],
                                 jnp.float32).reshape(1, 1, 1, 7)
            return jnp.asarray(out).reshape(1, 1, out.shape[0], 7)
        else:
            outputs = [o for o in (_per_class(cl) for cl in range(1, C))
                       if o is not None]
            out = np.concatenate(outputs, 0)   # matches reference (errors if empty)
            return jnp.asarray(out).reshape(1, 1, out.shape[0], 7)


# ---------------------------------- demo ------------------------------------


if __name__ == "__main__":
    key = jax.random.PRNGKey(0)
    num_priors = 100
    num_classes = 2
    k1, k2, k3, k4 = jax.random.split(key, 4)

    # Point-form priors in [0, 1] plus an (unused) variance channel -> [1,2,4N]
    cxcy = jax.random.uniform(k1, (num_priors, 2), minval=0.2, maxval=0.8)
    wh = jax.random.uniform(k2, (num_priors, 2), minval=0.05, maxval=0.3)
    prior_pf = jnp.concatenate([cxcy - wh / 2, cxcy + wh / 2], axis=1)
    prior_var = jnp.tile(jnp.array([0.1, 0.1, 0.2, 0.2], jnp.float32),
                         (num_priors, 1))
    prior = jnp.stack([prior_pf.reshape(-1), prior_var.reshape(-1)],
                      axis=0)[None].astype(jnp.float32)          # [1, 2, 4N]

    loc = (0.5 * jax.random.normal(k3, (1, num_priors * 4))).astype(jnp.float32)
    logits = jax.random.normal(k4, (num_priors, num_classes))
    conf = jax.nn.softmax(logits, axis=-1).reshape(1, -1).astype(jnp.float32)

    det = Detection(num_classes=num_classes, bkg_label=0, top_k=200,
                    conf_thresh=0.3, nms_thresh=0.5, keep_top_k=50)
    out = det.forward(loc, conf, prior)
    out = jax.block_until_ready(out)

    assert out.ndim == 4 and out.shape[0] == 1 and out.shape[1] == 1
    assert out.shape[-1] == 7 and out.dtype == jnp.float32
    print("KERNEL_OK")
</pallas_src>

<mosaic_0001>
module attributes {stable_mosaic.version = 11 : i64} {
  func.func @_decode_kernel(%arg0: i32, %arg1: memref<8x512xf32, #tpu.memory_space<vmem>>, %arg2: memref<4x512xf32, #tpu.memory_space<vmem>>) attributes {dimension_semantics = [#tpu.dimension_semantics<parallel>], iteration_bounds = array<i64: 1>, scalar_prefetch = 0 : i64, scratch_operands = 0 : i64, tpu.core_type = #tpu.core_type<tc>, window_params = [{transform_indices = @transform_0, window_bounds = array<i64: 8, 512>}, {transform_indices = @transform_1, window_bounds = array<i64: 4, 512>}]} {
    %c0 = arith.constant 0 : index
    %c0_0 = arith.constant 0 : index
    %0 = vector.load %arg1[%c0, %c0_0] : memref<8x512xf32, #tpu.memory_space<vmem>>, vector<8x512xf32>
    %1 = vector.extract_strided_slice %0 {offsets = [0, 0], sizes = [1, 512], strides = [1, 1]} : vector<8x512xf32> to vector<1x512xf32>
    %2 = vector.extract_strided_slice %0 {offsets = [1, 0], sizes = [1, 512], strides = [1, 1]} : vector<8x512xf32> to vector<1x512xf32>
    %3 = vector.extract_strided_slice %0 {offsets = [2, 0], sizes = [1, 512], strides = [1, 1]} : vector<8x512xf32> to vector<1x512xf32>
    %4 = vector.extract_strided_slice %0 {offsets = [3, 0], sizes = [1, 512], strides = [1, 1]} : vector<8x512xf32> to vector<1x512xf32>
    %5 = vector.extract_strided_slice %0 {offsets = [4, 0], sizes = [1, 512], strides = [1, 1]} : vector<8x512xf32> to vector<1x512xf32>
    %6 = vector.extract_strided_slice %0 {offsets = [5, 0], sizes = [1, 512], strides = [1, 1]} : vector<8x512xf32> to vector<1x512xf32>
    %7 = vector.extract_strided_slice %0 {offsets = [6, 0], sizes = [1, 512], strides = [1, 1]} : vector<8x512xf32> to vector<1x512xf32>
    %8 = vector.extract_strided_slice %0 {offsets = [7, 0], sizes = [1, 512], strides = [1, 1]} : vector<8x512xf32> to vector<1x512xf32>
    %9 = arith.addf %7, %5 : vector<1x512xf32>
    %cst = arith.constant 5.000000e-01 : f32
    %10 = vector.broadcast %cst : f32 to vector<1x512xf32>
    %11 = arith.mulf %9, %10 : vector<1x512xf32>
    %12 = arith.addf %8, %6 : vector<1x512xf32>
    %cst_1 = arith.constant 5.000000e-01 : f32
    %13 = vector.broadcast %cst_1 : f32 to vector<1x512xf32>
    %14 = arith.mulf %12, %13 : vector<1x512xf32>
    %15 = arith.subf %7, %5 : vector<1x512xf32>
    %16 = arith.subf %8, %6 : vector<1x512xf32>
    %cst_2 = arith.constant 1.000000e-01 : f32
    %17 = vector.broadcast %cst_2 : f32 to vector<1x512xf32>
    %18 = arith.mulf %1, %17 : vector<1x512xf32>
    %19 = arith.mulf %18, %15 : vector<1x512xf32>
    %20 = arith.addf %11, %19 : vector<1x512xf32>
    %cst_3 = arith.constant 1.000000e-01 : f32
    %21 = vector.broadcast %cst_3 : f32 to vector<1x512xf32>
    %22 = arith.mulf %2, %21 : vector<1x512xf32>
    %23 = arith.mulf %22, %16 : vector<1x512xf32>
    %24 = arith.addf %14, %23 : vector<1x512xf32>
    %cst_4 = arith.constant 2.000000e-01 : f32
    %25 = vector.broadcast %cst_4 : f32 to vector<1x512xf32>
    %26 = arith.mulf %3, %25 : vector<1x512xf32>
    %27 = math.exp %26 : vector<1x512xf32>
    %28 = arith.mulf %15, %27 : vector<1x512xf32>
    %cst_5 = arith.constant 2.000000e-01 : f32
    %29 = vector.broadcast %cst_5 : f32 to vector<1x512xf32>
    %30 = arith.mulf %4, %29 : vector<1x512xf32>
    %31 = math.exp %30 : vector<1x512xf32>
    %32 = arith.mulf %16, %31 : vector<1x512xf32>
    %cst_6 = arith.constant 5.000000e-01 : f32
    %33 = vector.broadcast %cst_6 : f32 to vector<1x512xf32>
    %34 = arith.mulf %28, %33 : vector<1x512xf32>
    %35 = arith.subf %20, %34 : vector<1x512xf32>
    %cst_7 = arith.constant 5.000000e-01 : f32
    %36 = vector.broadcast %cst_7 : f32 to vector<1x512xf32>
    %37 = arith.mulf %32, %36 : vector<1x512xf32>
    %38 = arith.subf %24, %37 : vector<1x512xf32>
    %c0_8 = arith.constant 0 : index
    %c0_9 = arith.constant 0 : index
    %39 = vector.load %arg2[%c0_8, %c0_9] : memref<4x512xf32, #tpu.memory_space<vmem>>, vector<1x512xf32>
    tpu.vector_store %arg2[%c0_8, %c0_9], %35 {strides = array<i32>} : memref<4x512xf32, #tpu.memory_space<vmem>>, vector<1x512xf32>,
    %c1 = arith.constant 1 : index
    %c0_10 = arith.constant 0 : index
    %40 = vector.load %arg2[%c1, %c0_10] : memref<4x512xf32, #tpu.memory_space<vmem>>, vector<1x512xf32>
    tpu.vector_store %arg2[%c1, %c0_10], %38 {strides = array<i32>} : memref<4x512xf32, #tpu.memory_space<vmem>>, vector<1x512xf32>,
    %41 = arith.addf %28, %35 : vector<1x512xf32>
    %c2 = arith.constant 2 : index
    %c0_11 = arith.constant 0 : index
    %42 = vector.load %arg2[%c2, %c0_11] : memref<4x512xf32, #tpu.memory_space<vmem>>, vector<1x512xf32>
    tpu.vector_store %arg2[%c2, %c0_11], %41 {strides = array<i32>} : memref<4x512xf32, #tpu.memory_space<vmem>>, vector<1x512xf32>,
    %43 = arith.addf %32, %38 : vector<1x512xf32>
    %c3 = arith.constant 3 : index
    %c0_12 = arith.constant 0 : index
    %44 = vector.load %arg2[%c3, %c0_12] : memref<4x512xf32, #tpu.memory_space<vmem>>, vector<1x512xf32>
    tpu.vector_store %arg2[%c3, %c0_12], %43 {strides = array<i32>} : memref<4x512xf32, #tpu.memory_space<vmem>>, vector<1x512xf32>,
    return
  }
  func.func @transform_0(%arg0: i32) -> (i32, i32) {
    %c0_i32 = arith.constant 0 : i32
    %c0_i32_0 = arith.constant 0 : i32
    return %c0_i32, %arg0 : i32, i32
  }
  func.func @transform_1(%arg0: i32) -> (i32, i32) {
    %c0_i32 = arith.constant 0 : i32
    %c0_i32_0 = arith.constant 0 : i32
    return %c0_i32, %arg0 : i32, i32
  }
}

</mosaic_0001>

<bundles_post_ra>
// kernel: squeeze.2
= control target key start
LH: loop header
LB: loop body
LE: loop exit
PB: predicated region body
PF: predicated region fallthrough
CT: control target
= control target key end

     0   :  { %s462_s8 = smov 116   ;;  %s463_s9 = smov 120   ;;  %vm7_vm0 = vcmask 31744   ;;  %s905_s0 = inlined_call_operand.vmem [shape: f32[400], index: 0, kind: input, shape index: {}]   ;;  %s906_s1 = inlined_call_operand.vmem [shape: f32[100,4], index: 1, kind: output, shape index: {}]  }
   0x1   :  { %v4_v0 = vld [vmem:[%s905_s0] sm:$0xf]  ;;  %s461_s0 = smov 124   ;;  %s464_s10 = smov 112  }
   0x2   :  { %5 = vst [vmem:[#allocation0] sm:$0xf] %v4_v0  ;;  %s465_s11 = smov 108   ;;  %s466_s12 = smov 104  }
   0x3   :  { %s467_s13 = smov 100   ;;  %s468_s14 = smov 96  }
   0x4   :  { %s469_s15 = smov 92   ;;  %s470_s16 = smov 88  }
   0x5   :  { %s471_s17 = smov 84   ;;  %s472_s18 = smov 80  }
   0x6   :  { %s473_s19 = smov 76   ;;  %s474_s20 = smov 72  }
   0x7   :  { %s475_s21 = smov 68   ;;  %s476_s22 = smov 64  }
   0x8   :  { %s477_s23 = smov 60   ;;  %s478_s24 = smov 56  }
   0x9   :  { %v15_v1 = vld [vmem:[#allocation0] sm:$0xf]   ;;  %s479_s25 = smov 52   ;;  %s480_s26 = smov 48  }
   0xa   :  { %v39_v2 = vld [vmem:[#allocation0] sm:$0xf]   ;;  %16 = vrot.lane.b32.xlu0 %v15_v1, %s461_s0  ;;  %s481_s27 = smov 44   ;;  %s482_s28 = smov 40  }
   0xb   :  { %40 = vrot.lane.b32.xlu1 %v39_v2, %s462_s8  ;;  %v27_v3 = vld [vmem:[#allocation0] sm:$0xf]   ;;  %s483_s29 = smov 36   ;;  %s484_s30 = smov 32  }
   0xc   :  { %v51_v4 = vld [vmem:[#allocation0] sm:$0x7]  }
   0xd   :  { %v61_v5 = vld [vmem:[#allocation0] sm:$0x7]  }
   0xe   :  { %28 = vrot.lane.b32.xlu0 %v27_v3, %s463_s9  ;;  %v71_v6 = vld [vmem:[#allocation0] sm:$0x7]   ;;  %s485_s9 = smov 28  }
   0xf   :  { %52 = vrot.lane.b32.xlu1 %v51_v4, %s464_s10  ;;  %v81_v7 = vld [vmem:[#allocation0] sm:$0x7]   ;;  %s486_s10 = smov 24  }
  0x10   :  { %v91_v8 = vld [vmem:[#allocation0] sm:$0x7]  }
  0x11   :  { %v101_v9 = vld [vmem:[#allocation0] sm:$0x7]  }
  0x12   :  { %62 = vrot.lane.b32.xlu0 %v61_v5, %s465_s11  ;;  %v111_v10 = vld [vmem:[#allocation0] sm:$0x7]   ;;  %s487_s11 = smov 20  }
  0x13   :  { %72 = vrot.lane.b32.xlu1 %v71_v6, %s466_s12  ;;  %v121_v11 = vld [vmem:[#allocation0] sm:$0x7]   ;;  %s488_s12 = smov 16  }
  0x14   :  { %v131_v12 = vld [vmem:[#allocation0] sm:$0x7]  }
  0x15   :  { %v141_v13 = vld [vmem:[#allocation0] sm:$0x7]  }
  0x16   :  { %82 = vrot.lane.b32.xlu0 %v81_v7, %s467_s13  ;;  %v151_v14 = vld [vmem:[#allocation0] sm:$0x7]   ;;  %s489_s13 = smov 12  }
  0x17   :  { %92 = vrot.lane.b32.xlu1 %v91_v8, %s468_s14  ;;  %v161_v15 = vld [vmem:[#allocation0] sm:$0x7]   ;;  %s490_s14 = smov 8  }
  0x18   :  { %v171_v16 = vld [vmem:[#allocation0] sm:$0x7]  }
  0x19   :  { %v181_v17 = vld [vmem:[#allocation0] sm:$0x7]  }
  0x1a   :  { %102 = vrot.lane.b32.xlu0 %v101_v9, %s469_s15  ;;  %v191_v18 = vld [vmem:[#allocation0] sm:$0x7]   ;;  %s491_s15 = smov 4  }
  0x1b   :  { %112 = vrot.lane.b32.xlu1 %v111_v10, %s470_s16  ;;  %v201_v19 = vld [vmem:[#allocation0] sm:$0x7]  }
  0x1c   :  { %v211_v20 = vld [vmem:[#allocation0] sm:$0x7]  }
  0x1d   :  { %v221_v21 = vld [vmem:[#allocation0] sm:$0x7]  }
  0x1e   :  { %122 = vrot.lane.b32.xlu0 %v121_v11, %s471_s17  ;;  %v231_v22 = vld [vmem:[#allocation0] sm:$0x7]  }
  0x1f   :  { %132 = vrot.lane.b32.xlu1 %v131_v12, %s472_s18  ;;  %v241_v23 = vld [vmem:[#allocation0] sm:$0x7]  }
  0x20   :  { %v251_v24 = vld [vmem:[#allocation0] sm:$0x7]  }
  0x21   :  { %v261_v25 = vld [vmem:[#allocation0] sm:$0x7]  }
  0x22   :  { %142 = vrot.lane.b32.xlu0 %v141_v13, %s473_s19  ;;  %v271_v26 = vld [vmem:[#allocation0] sm:$0x7]  }
  0x23   :  { %152 = vrot.lane.b32.xlu1 %v151_v14, %s474_s20  ;;  %v6_v27 = vld [vmem:[#allocation0] sm:$0xf]  }
  0x24   :  { %8 = vst.msk [vmem:[%s906_s1] sm:$0x1] %vm7_vm0, %v6_v27   ;;  %331 = vst.msk [vmem:[%s906_s1 + $0x1f] sm:$0x2] %vm7_vm0, %v6_v27   ;;  %v281_v28 = vld [vmem:[#allocation0] sm:$0x7]  }
  0x25   :  { %332 = vst.msk [vmem:[%s906_s1 + $0x3e] sm:$0x4] %vm7_vm0, %v6_v27   ;;  %333 = vst.msk [vmem:[%s906_s1 + $0x5d] sm:$0x8] %vm7_vm0, %v6_v27   ;;  %v291_v29 = vld [vmem:[#allocation0] sm:$0x7]  }
  0x26   :  { %162 = vrot.lane.b32.xlu0 %v161_v15, %s475_s21  ;;  %v301_v30 = vld [vmem:[#allocation0] sm:$0x7]  }
  0x27   :  { %172 = vrot.lane.b32.xlu1 %v171_v16, %s476_s22  ;;  %v311_v31 = vld [vmem:[#allocation0] sm:$0x7]  }
  0x28   :  { %v321_v32 = vld [vmem:[#allocation0] sm:$0x7]  }
  0x2a   :  { %182 = vrot.lane.b32.xlu0 %v181_v17, %s477_s23 }
  0x2b   :  { %192 = vrot.lane.b32.xlu1 %v191_v18, %s478_s24 }
  0x2e   :  { %202 = vrot.lane.b32.xlu0 %v201_v19, %s479_s25 }
  0x2f   :  { %212 = vrot.lane.b32.xlu1 %v211_v20, %s480_s26 }
  0x32   :  { %222 = vrot.lane.b32.xlu0 %v221_v21, %s481_s27 }
  0x33   :  { %232 = vrot.lane.b32.xlu1 %v231_v22, %s482_s28 }
  0x36   :  { %242 = vrot.lane.b32.xlu0 %v241_v23, %s483_s29 }
  0x37   :  { %252 = vrot.lane.b32.xlu1 %v251_v24, %s484_s30 }
  0x3a   :  { %262 = vrot.lane.b32.xlu0 %v261_v25, %s485_s9 }
  0x3b   :  { %272 = vrot.lane.b32.xlu1 %v271_v26, %s486_s10 }
  0x3e   :  { %282 = vrot.lane.b32.xlu0 %v281_v28, %s487_s11 }
  0x3f   :  { %292 = vrot.lane.b32.xlu1 %v291_v29, %s488_s12 }
  0x42   :  { %302 = vrot.lane.b32.xlu0 %v301_v30, %s489_s13 }
  0x43   :  { %312 = vrot.lane.b32.xlu1 %v311_v31, %s490_s14 }
  0x46   :  { %322 = vrot.lane.b32.xlu0 %v321_v32, %s491_s15 }
  0x7c   :  { %v17_v33 = vpop.permute.xlu0 %16  }
  0x7d   :  { %v41_v34 = vpop.permute.xlu1 %40   ;;  %334 = vst.msk [vmem:[%s906_s1 + $0x1] sm:$0x1] %vm7_vm0, %v17_v33   ;;  %335 = vst.msk [vmem:[%s906_s1 + $0x20] sm:$0x2] %vm7_vm0, %v17_v33  }
  0x7e   :  { %336 = vst.msk [vmem:[%s906_s1 + $0x3f] sm:$0x4] %vm7_vm0, %v17_v33   ;;  %337 = vst.msk [vmem:[%s906_s1 + $0x5e] sm:$0x8] %vm7_vm0, %v17_v33  }
  0x7f   :  { %342 = vst.msk [vmem:[%s906_s1 + $0x3] sm:$0x1] %vm7_vm0, %v41_v34   ;;  %343 = vst.msk [vmem:[%s906_s1 + $0x22] sm:$0x2] %vm7_vm0, %v41_v34  }
  0x80   :  { %344 = vst.msk [vmem:[%s906_s1 + $0x41] sm:$0x4] %vm7_vm0, %v41_v34   ;;  %345 = vst.msk [vmem:[%s906_s1 + $0x60] sm:$0x8] %vm7_vm0, %v41_v34   ;;  %v29_v35 = vpop.permute.xlu0 %28  }
  0x81   :  { %v53_v36 = vpop.permute.xlu1 %52   ;;  %338 = vst.msk [vmem:[%s906_s1 + $0x2] sm:$0x1] %vm7_vm0, %v29_v35   ;;  %339 = vst.msk [vmem:[%s906_s1 + $0x21] sm:$0x2] %vm7_vm0, %v29_v35  }
  0x82   :  { %340 = vst.msk [vmem:[%s906_s1 + $0x40] sm:$0x4] %vm7_vm0, %v29_v35   ;;  %341 = vst.msk [vmem:[%s906_s1 + $0x5f] sm:$0x8] %vm7_vm0, %v29_v35  }
  0x83   :  { %346 = vst.msk [vmem:[%s906_s1 + $0x4] sm:$0x1] %vm7_vm0, %v53_v36   ;;  %347 = vst.msk [vmem:[%s906_s1 + $0x23] sm:$0x2] %vm7_vm0, %v53_v36  }
  0x84   :  { %348 = vst.msk [vmem:[%s906_s1 + $0x42] sm:$0x4] %vm7_vm0, %v53_v36   ;;  %v63_v37 = vpop.permute.xlu0 %62  }
  0x85   :  { %v73_v38 = vpop.permute.xlu1 %72   ;;  %349 = vst.msk [vmem:[%s906_s1 + $0x5] sm:$0x1] %vm7_vm0, %v63_v37   ;;  %350 = vst.msk [vmem:[%s906_s1 + $0x24] sm:$0x2] %vm7_vm0, %v63_v37  }
  0x86   :  { %351 = vst.msk [vmem:[%s906_s1 + $0x43] sm:$0x4] %vm7_vm0, %v63_v37   ;;  %352 = vst.msk [vmem:[%s906_s1 + $0x6] sm:$0x1] %vm7_vm0, %v73_v38  }
  0x87   :  { %353 = vst.msk [vmem:[%s906_s1 + $0x25] sm:$0x2] %vm7_vm0, %v73_v38   ;;  %354 = vst.msk [vmem:[%s906_s1 + $0x44] sm:$0x4] %vm7_vm0, %v73_v38  }
  0x88   :  { %v83_v39 = vpop.permute.xlu0 %82  }
  0x89   :  { %v93_v40 = vpop.permute.xlu1 %92   ;;  %355 = vst.msk [vmem:[%s906_s1 + $0x7] sm:$0x1] %vm7_vm0, %v83_v39   ;;  %356 = vst.msk [vmem:[%s906_s1 + $0x26] sm:$0x2] %vm7_vm0, %v83_v39  }
  0x8a   :  { %357 = vst.msk [vmem:[%s906_s1 + $0x45] sm:$0x4] %vm7_vm0, %v83_v39   ;;  %358 = vst.msk [vmem:[%s906_s1 + $0x8] sm:$0x1] %vm7_vm0, %v93_v40  }
  0x8b   :  { %359 = vst.msk [vmem:[%s906_s1 + $0x27] sm:$0x2] %vm7_vm0, %v93_v40   ;;  %360 = vst.msk [vmem:[%s906_s1 + $0x46] sm:$0x4] %vm7_vm0, %v93_v40  }
  0x8c   :  { %v103_v41 = vpop.permute.xlu0 %102  }
  0x8d   :  { %v113_v42 = vpop.permute.xlu1 %112   ;;  %361 = vst.msk [vmem:[%s906_s1 + $0x9] sm:$0x1] %vm7_vm0, %v103_v41   ;;  %362 = vst.msk [vmem:[%s906_s1 + $0x28] sm:$0x2] %vm7_vm0, %v103_v41  }
  0x8e   :  { %363 = vst.msk [vmem:[%s906_s1 + $0x47] sm:$0x4] %vm7_vm0, %v103_v41   ;;  %364 = vst.msk [vmem:[%s906_s1 + $0xa] sm:$0x1] %vm7_vm0, %v113_v42  }
  0x8f   :  { %365 = vst.msk [vmem:[%s906_s1 + $0x29] sm:$0x2] %vm7_vm0, %v113_v42   ;;  %366 = vst.msk [vmem:[%s906_s1 + $0x48] sm:$0x4] %vm7_vm0, %v113_v42  }
  0x90   :  { %v123_v43 = vpop.permute.xlu0 %122  }
  0x91   :  { %v133_v44 = vpop.permute.xlu1 %132   ;;  %367 = vst.msk [vmem:[%s906_s1 + $0xb] sm:$0x1] %vm7_vm0, %v123_v43   ;;  %368 = vst.msk [vmem:[%s906_s1 + $0x2a] sm:$0x2] %vm7_vm0, %v123_v43  }
  0x92   :  { %369 = vst.msk [vmem:[%s906_s1 + $0x49] sm:$0x4] %vm7_vm0, %v123_v43   ;;  %370 = vst.msk [vmem:[%s906_s1 + $0xc] sm:$0x1] %vm7_vm0, %v133_v44  }
  0x93   :  { %371 = vst.msk [vmem:[%s906_s1 + $0x2b] sm:$0x2] %vm7_vm0, %v133_v44   ;;  %372 = vst.msk [vmem:[%s906_s1 + $0x4a] sm:$0x4] %vm7_vm0, %v133_v44  }
  0x94   :  { %v143_v45 = vpop.permute.xlu0 %142  }
  0x95   :  { %v153_v46 = vpop.permute.xlu1 %152   ;;  %373 = vst.msk [vmem:[%s906_s1 + $0xd] sm:$0x1] %vm7_vm0, %v143_v45   ;;  %374 = vst.msk [vmem:[%s906_s1 + $0x2c] sm:$0x2] %vm7_vm0, %v143_v45  }
  0x96   :  { %375 = vst.msk [vmem:[%s906_s1 + $0x4b] sm:$0x4] %vm7_vm0, %v143_v45   ;;  %376 = vst.msk [vmem:[%s906_s1 + $0xe] sm:$0x1] %vm7_vm0, %v153_v46  }
  0x97   :  { %377 = vst.msk [vmem:[%s906_s1 + $0x2d] sm:$0x2] %vm7_vm0, %v153_v46   ;;  %378 = vst.msk [vmem:[%s906_s1 + $0x4c] sm:$0x4] %vm7_vm0, %v153_v46  }
  0x98   :  { %v163_v47 = vpop.permute.xlu0 %162  }
  0x99   :  { %v173_v48 = vpop.permute.xlu1 %172   ;;  %379 = vst.msk [vmem:[%s906_s1 + $0xf] sm:$0x1] %vm7_vm0, %v163_v47   ;;  %380 = vst.msk [vmem:[%s906_s1 + $0x2e] sm:$0x2] %vm7_vm0, %v163_v47  }
  0x9a   :  { %381 = vst.msk [vmem:[%s906_s1 + $0x4d] sm:$0x4] %vm7_vm0, %v163_v47   ;;  %382 = vst.msk [vmem:[%s906_s1 + $0x10] sm:$0x1] %vm7_vm0, %v173_v48  }
  0x9b   :  { %383 = vst.msk [vmem:[%s906_s1 + $0x2f] sm:$0x2] %vm7_vm0, %v173_v48   ;;  %384 = vst.msk [vmem:[%s906_s1 + $0x4e] sm:$0x4] %vm7_vm0, %v173_v48  }
  0x9c   :  { %v183_v49 = vpop.permute.xlu0 %182  }
  0x9d   :  { %v193_v50 = vpop.permute.xlu1 %192   ;;  %385 = vst.msk [vmem:[%s906_s1 + $0x11] sm:$0x1] %vm7_vm0, %v183_v49   ;;  %386 = vst.msk [vmem:[%s906_s1 + $0x30] sm:$0x2] %vm7_vm0, %v183_v49  }
  0x9e   :  { %387 = vst.msk [vmem:[%s906_s1 + $0x4f] sm:$0x4] %vm7_vm0, %v183_v49   ;;  %388 = vst.msk [vmem:[%s906_s1 + $0x12] sm:$0x1] %vm7_vm0, %v193_v50  }
  0x9f   :  { %389 = vst.msk [vmem:[%s906_s1 + $0x31] sm:$0x2] %vm7_vm0, %v193_v50   ;;  %390 = vst.msk [vmem:[%s906_s1 + $0x50] sm:$0x4] %vm7_vm0, %v193_v50  }
  0xa0   :  { %v203_v51 = vpop.permute.xlu0 %202  }
  0xa1   :  { %v213_v52 = vpop.permute.xlu1 %212   ;;  %391 = vst.msk [vmem:[%s906_s1 + $0x13] sm:$0x1] %vm7_vm0, %v203_v51   ;;  %392 = vst.msk [vmem:[%s906_s1 + $0x32] sm:$0x2] %vm7_vm0, %v203_v51  }
  0xa2   :  { %393 = vst.msk [vmem:[%s906_s1 + $0x51] sm:$0x4] %vm7_vm0, %v203_v51   ;;  %394 = vst.msk [vmem:[%s906_s1 + $0x14] sm:$0x1] %vm7_vm0, %v213_v52  }
  0xa3   :  { %395 = vst.msk [vmem:[%s906_s1 + $0x33] sm:$0x2] %vm7_vm0, %v213_v52   ;;  %396 = vst.msk [vmem:[%s906_s1 + $0x52] sm:$0x4] %vm7_vm0, %v213_v52  }
  0xa4   :  { %v223_v53 = vpop.permute.xlu0 %222  }
  0xa5   :  { %v233_v54 = vpop.permute.xlu1 %232   ;;  %397 = vst.msk [vmem:[%s906_s1 + $0x15] sm:$0x1] %vm7_vm0, %v223_v53   ;;  %398 = vst.msk [vmem:[%s906_s1 + $0x34] sm:$0x2] %vm7_vm0, %v223_v53  }
  0xa6   :  { %399 = vst.msk [vmem:[%s906_s1 + $0x53] sm:$0x4] %vm7_vm0, %v223_v53   ;;  %400 = vst.msk [vmem:[%s906_s1 + $0x16] sm:$0x1] %vm7_vm0, %v233_v54  }
  0xa7   :  { %401 = vst.msk [vmem:[%s906_s1 + $0x35] sm:$0x2] %vm7_vm0, %v233_v54   ;;  %402 = vst.msk [vmem:[%s906_s1 + $0x54] sm:$0x4] %vm7_vm0, %v233_v54  }
  0xa8   :  { %v243_v55 = vpop.permute.xlu0 %242  }
  0xa9   :  { %v253_v56 = vpop.permute.xlu1 %252   ;;  %403 = vst.msk [vmem:[%s906_s1 + $0x17] sm:$0x1] %vm7_vm0, %v243_v55   ;;  %404 = vst.msk [vmem:[%s906_s1 + $0x36] sm:$0x2] %vm7_vm0, %v243_v55  }
  0xaa   :  { %405 = vst.msk [vmem:[%s906_s1 + $0x55] sm:$0x4] %vm7_vm0, %v243_v55   ;;  %406 = vst.msk [vmem:[%s906_s1 + $0x18] sm:$0x1] %vm7_vm0, %v253_v56  }
  0xab   :  { %407 = vst.msk [vmem:[%s906_s1 + $0x37] sm:$0x2] %vm7_vm0, %v253_v56   ;;  %408 = vst.msk [vmem:[%s906_s1 + $0x56] sm:$0x4] %vm7_vm0, %v253_v56  }
  0xac   :  { %v263_v57 = vpop.permute.xlu0 %262  }
  0xad   :  { %v273_v58 = vpop.permute.xlu1 %272   ;;  %409 = vst.msk [vmem:[%s906_s1 + $0x19] sm:$0x1] %vm7_vm0, %v263_v57   ;;  %410 = vst.msk [vmem:[%s906_s1 + $0x38] sm:$0x2] %vm7_vm0, %v263_v57  }
  0xae   :  { %411 = vst.msk [vmem:[%s906_s1 + $0x57] sm:$0x4] %vm7_vm0, %v263_v57   ;;  %412 = vst.msk [vmem:[%s906_s1 + $0x1a] sm:$0x1] %vm7_vm0, %v273_v58  }
  0xaf   :  { %413 = vst.msk [vmem:[%s906_s1 + $0x39] sm:$0x2] %vm7_vm0, %v273_v58   ;;  %414 = vst.msk [vmem:[%s906_s1 + $0x58] sm:$0x4] %vm7_vm0, %v273_v58  }
  0xb0   :  { %v283_v59 = vpop.permute.xlu0 %282  }
  0xb1   :  { %v293_v60 = vpop.permute.xlu1 %292   ;;  %415 = vst.msk [vmem:[%s906_s1 + $0x1b] sm:$0x1] %vm7_vm0, %v283_v59   ;;  %416 = vst.msk [vmem:[%s906_s1 + $0x3a] sm:$0x2] %vm7_vm0, %v283_v59  }
  0xb2   :  { %417 = vst.msk [vmem:[%s906_s1 + $0x59] sm:$0x4] %vm7_vm0, %v283_v59   ;;  %418 = vst.msk [vmem:[%s906_s1 + $0x1c] sm:$0x1] %vm7_vm0, %v293_v60  }
  0xb3   :  { %419 = vst.msk [vmem:[%s906_s1 + $0x3b] sm:$0x2] %vm7_vm0, %v293_v60   ;;  %420 = vst.msk [vmem:[%s906_s1 + $0x5a] sm:$0x4] %vm7_vm0, %v293_v60  }
  0xb4   :  { %v303_v61 = vpop.permute.xlu0 %302  }
  0xb5   :  { %v313_v62 = vpop.permute.xlu1 %312   ;;  %421 = vst.msk [vmem:[%s906_s1 + $0x1d] sm:$0x1] %vm7_vm0, %v303_v61   ;;  %422 = vst.msk [vmem:[%s906_s1 + $0x3c] sm:$0x2] %vm7_vm0, %v303_v61  }
  0xb6   :  { %423 = vst.msk [vmem:[%s906_s1 + $0x5b] sm:$0x4] %vm7_vm0, %v303_v61   ;;  %424 = vst.msk [vmem:[%s906_s1 + $0x1e] sm:$0x1] %vm7_vm0, %v313_v62  }
  0xb7   :  { %425 = vst.msk [vmem:[%s906_s1 + $0x3d] sm:$0x2] %vm7_vm0, %v313_v62   ;;  %426 = vst.msk [vmem:[%s906_s1 + $0x5c] sm:$0x4] %vm7_vm0, %v313_v62  }
  0xb8   :  { %v323_v63 = vpop.permute.xlu0 %322  }
  0xb9   :  { %427 = vst.msk [vmem:[%s906_s1 + $0x1f] sm:$0x1] %vm7_vm0, %v323_v63   ;;  %428 = vst.msk [vmem:[%s906_s1 + $0x3e] sm:$0x2] %vm7_vm0, %v323_v63  }
  0xba   :  { %429 = vst.msk [vmem:[%s906_s1 + $0x5d] sm:$0x4] %vm7_vm0, %v323_v63  }

// kernel: _decode_device.1
= control target key start
LH: loop header
LB: loop body
LE: loop exit
PB: predicated region body
PF: predicated region fallthrough
CT: control target
= control target key end

     0   :  { %v219_v38 = vmov 1966171168   ;;  %v117_v43 = vlaneseq  ;;  %s254_s0 = inlined_call_operand.vmem [shape: f32[8,512], index: 0, kind: input, shape index: {}]   ;;  %s255_s1 = inlined_call_operand.vmem [shape: f32[4,512], index: 1, kind: output, shape index: {}]  }
   0x1   :  { %v8_v0 = vld [vmem:[%s254_s0] sm:$0xff]  ;;  %v9_v1 = vld [vmem:[%s254_s0 + $0x8] sm:$0xff]  ;;  %v10_v3 = vld [vmem:[%s254_s0 + $0x10] sm:$0xff]  ;;  %v115_v39 = vunpack.c.l.s4 %v219_v38 }
   0x2   :  { %v16_v2 = vrot.slane %v8_v0, 6  ;;  %v17_v4 = vrot.slane %v9_v1, 6  ;;  %v11_v5 = vld [vmem:[%s254_s0 + $0x18] sm:$0xff]  ;;  %v18_v6 = vrot.slane %v10_v3, 6  ;;  %v72_v8 = vmul.f32 0.2, %v8_v0 }
   0x3   :  { %v19_v7 = vrot.slane %v11_v5, 6  ;;  %v73_v9 = vmul.f32 0.2, %v9_v1  ;;  %v74_v11 = vmul.f32 0.2, %v10_v3  ;;  %v116_v56 = vunpack.c.0.s8 %v115_v39 }
   0x4   :  { %v32_v10 = vsub.f32 %v8_v0, %v16_v2  ;;  %v33_v12 = vsub.f32 %v9_v1, %v17_v4  ;;  %v75_v13 = vmul.f32 0.2, %v11_v5  ;;  %v76_v14 = vmul.f32 1.442695, %v72_v8 }
   0x5   :  { %v78_v15 = vmul.f32 1.442695, %v73_v9  ;;  %v34_v16 = vsub.f32 %v10_v3, %v18_v6  ;;  %v80_v17 = vmul.f32 1.442695, %v74_v11  ;;  %v35_v18 = vsub.f32 %v11_v5, %v19_v7 }
   0x6   :  { %211 = vpow2.f32 %v76_v14  ;;  %v82_v19 = vmul.f32 1.442695, %v75_v13  ;;  %v36_v20 = vmul.f32 0.1, %v8_v0  ;;  %v44_v21 = vrot.slane %v32_v10, 6 }
   0x7   :  { %213 = vpow2.f32 %v78_v15  ;;  %v37_v22 = vmul.f32 0.1, %v9_v1  ;;  %v45_v23 = vrot.slane %v33_v12, 6  ;;  %v38_v24 = vmul.f32 0.1, %v10_v3 }
   0x8   :  { %215 = vpow2.f32 %v80_v17  ;;  %v46_v25 = vrot.slane %v34_v16, 6  ;;  %v39_v26 = vmul.f32 0.1, %v11_v5  ;;  %v47_v27 = vrot.slane %v35_v18, 6 }
   0x9   :  { %217 = vpow2.f32 %v82_v19  ;;  %v24_v28 = vadd.f32 %v16_v2, %v8_v0  ;;  %v52_v29 = vmul.f32 %v44_v21, %v36_v20  ;;  %v25_v30 = vadd.f32 %v17_v4, %v9_v1 }
   0xa   :  { %v53_v31 = vmul.f32 %v45_v23, %v37_v22  ;;  %v26_v32 = vadd.f32 %v18_v6, %v10_v3  ;;  %v54_v33 = vmul.f32 %v46_v25, %v38_v24  ;;  %v27_v34 = vadd.f32 %v19_v7, %v11_v5 }
   0xb   :  { %v55_v35 = vmul.f32 %v47_v27, %v39_v26  ;;  %v28_v36 = vmul.f32 0.5, %v24_v28  ;;  %v60_v37 = vrot.slane %v52_v29, 2  ;;  %v29_v41 = vmul.f32 0.5, %v25_v30 }
   0xc   :  { %v61_v42 = vrot.slane %v53_v31, 2  ;;  %v30_v45 = vmul.f32 0.5, %v26_v32  ;;  %v62_v46 = vrot.slane %v54_v33, 2  ;;  %v31_v49 = vmul.f32 0.5, %v27_v34 }
   0xd   :  { %v63_v50 = vrot.slane %v55_v35, 2  ;;  %v68_v53 = vadd.f32 %v60_v37, %v28_v36  ;;  %v118_v60 = vshrl.u32 %v117_v43, 7  ;;  %vm140_vm0 = vcmp.lt.s32.totalorder %v117_v43, 512 }
   0xe   :  { %v69_v57 = vadd.f32 %v61_v42, %v29_v41  ;;  %v70_v61 = vadd.f32 %v62_v46, %v30_v45 }
   0xf   :  { %v71_v0 = vadd.f32 %v63_v50, %v31_v49  ;;  %v119_v7 = vsub.s32 %v116_v56, %v118_v60 }
  0x10   :  { %v212_v40 = vpop.eup %211 }
  0x11   :  { %v214_v44 = vpop.eup %213  ;;  %v88_v47 = vrot.slane %v212_v40, 4 }
  0x12   :  { %v216_v48 = vpop.eup %215  ;;  %v89_v51 = vrot.slane %v214_v44, 4 }
  0x13   :  { %v218_v52 = vpop.eup %217  ;;  %v90_v54 = vrot.slane %v216_v48, 4  ;;  %v96_v55 = vmul.f32 %v88_v47, %v32_v10 }
  0x14   :  { %v91_v58 = vrot.slane %v218_v52, 4  ;;  %v97_v59 = vmul.f32 %v89_v51, %v33_v12 }
  0x15   :  { %v98_v62 = vmul.f32 %v90_v54, %v34_v16  ;;  %v100_v63 = vmul.f32 0.5, %v96_v55 }
  0x16   :  { %v99_v1 = vmul.f32 %v91_v58, %v35_v18  ;;  %v101_v2 = vmul.f32 0.5, %v97_v59 }
  0x17   :  { %v102_v3 = vmul.f32 0.5, %v98_v62  ;;  %v104_v4 = vsub.f32 %v68_v53, %v100_v63 }
  0x18   :  { %v103_v5 = vmul.f32 0.5, %v99_v1  ;;  %v105_v6 = vsub.f32 %v69_v57, %v101_v2 }
  0x19   :  { %v106_v8 = vsub.f32 %v70_v61, %v102_v3  ;;  %v155_v9 = vadd.f32 %v104_v4, %v96_v55 }
  0x1a   :  { %v107_v11 = vsub.f32 %v71_v0, %v103_v5  ;;  %v112_v10 = vcombine.high %v104_v4, %v105_v6  ;;  %v156_v13 = vadd.f32 %v105_v6, %v97_v59 }
  0x1b   :  { %v157_v14 = vadd.f32 %v106_v8, %v98_v62 }
  0x1c   :  { %v113_v15 = vcombine.high %v106_v8, %v107_v11  ;;  %v120_v12 = vrot.slane %v112_v10, %v119_v7  ;;  %v158_v17 = vadd.f32 %v107_v11, %v99_v1  ;;  %v163_v19 = vcombine.high %v155_v9, %v156_v13 }
  0x1e   :  { %v127_v16 = vrot.slane %v113_v15, %v119_v7  ;;  %v164_v20 = vcombine.high %v157_v14, %v158_v17  ;;  %v171_v21 = vrot.slane %v163_v19, %v119_v7 }
  0x20   :  { %v128_v18 = vcombine.low %v120_v12, %v127_v16  ;;  %v143_v22 = vcombine.high %v120_v12, %v127_v16  ;;  %v178_v23 = vrot.slane %v164_v20, %v119_v7 }
  0x22   :  { %v135_v24 = vrot.slane %v128_v18, %v119_v7  ;;  %v150_v25 = vrot.slane %v143_v22, %v119_v7  ;;  %v179_v26 = vcombine.low %v171_v21, %v178_v23  ;;  %v191_v27 = vcombine.high %v171_v21, %v178_v23 }
  0x24   :  { %v136_v28 = vcombine.high %v135_v24, %v135_v24  ;;  %v151_v29 = vcombine.high %v150_v25, %v150_v25  ;;  %v186_v30 = vrot.slane %v179_v26, %v119_v7  ;;  %v198_v31 = vrot.slane %v191_v27, %v119_v7 }
  0x26   :  { %142 = vst.msk [vmem:[%s255_s1] ss:$4 sm:$0xf] %vm140_vm0, %v136_v28  ;;  %207 = vst.msk [vmem:[%s255_s1 + $0x1] ss:$4 sm:$0xf] %vm140_vm0, %v151_v29  ;;  %v187_v32 = vcombine.high %v186_v30, %v186_v30  ;;  %v199_v33 = vcombine.high %v198_v31, %v198_v31 }
  0x28   :  { %208 = vst.msk [vmem:[%s255_s1 + $0x2] ss:$4 sm:$0xf] %vm140_vm0, %v187_v32  ;;  %209 = vst.msk [vmem:[%s255_s1 + $0x3] ss:$4 sm:$0xf] %vm140_vm0, %v199_v33 }

</bundles_post_ra>
